<compile_context>
chip_gen: v7x
topology: tpu7x:2x2x1
jax: 0.10.0
libtpu: 0.0.40
codegen_flags: <defaults>
</compile_context>

<pallas_src>
import jax
import jax.numpy as jnp
from jax.experimental import pallas as pl
from jax.experimental.pallas import tpu as pltpu

_VMEM_SPEC = pl.BlockSpec(memory_space=pltpu.MemorySpace.VMEM)


# ------------------------------ fused kernel --------------------------------

def _fused_forward_kernel(x_ref, w1_ref, b1_ref, w2_ref, b2_ref, w3_ref, b3_ref,
                          fc1w_ref, fc1b_ref, fc2w_ref, fc2b_ref,
                          o_ref, s1_ref, s2_ref, s3_ref):
    """Whole ConvModel forward on a (B, L, Cin) channels-last input tile."""
    B = x_ref.shape[0]

    def conv_relu(x, w_ref, b_ref):
        # x: (L, Cin); w_ref: (K, Cin, Cout); b_ref: (1, Cout) -> (Lout, Cout)
        K = w_ref.shape[0]
        Lout = x.shape[0] - K + 1
        acc = jnp.dot(x[0:Lout, :], w_ref[0], preferred_element_type=jnp.float32)
        for k in range(1, K):  # K is static & tiny -> unrolled shifted matmuls
            acc = acc + jnp.dot(x[k:k + Lout, :], w_ref[k],
                                preferred_element_type=jnp.float32)
        return jnp.maximum(acc + b_ref[...], 0.0)

    def pool2(y, s_ref):
        # MaxPool1d(kernel=2, stride=2) over rows (floor behavior via //2):
        # park y in VMEM scratch, read even/odd rows with stride-2 views.
        P = y.shape[0] // 2
        s_ref[...] = y
        even = s_ref[pl.ds(0, P, stride=2), :]
        odd = s_ref[pl.ds(1, P, stride=2), :]
        return jnp.maximum(even, odd)

    for b in range(B):  # B is tiny & static -> unrolled
        a = x_ref[b]                                        # (L, Cin)
        a = pool2(conv_relu(a, w1_ref, b1_ref), s1_ref)     # (P1, C1)
        a = pool2(conv_relu(a, w2_ref, b2_ref), s2_ref)     # (P2, C2)
        a = pool2(conv_relu(a, w3_ref, b3_ref), s3_ref)     # (P3, C3)

        # Classifier. fc1 weight rows were pre-permuted to channels-last
        # flatten order at init, so fc1 is just Lf slab matmuls over `a` rows.
        Lf, C3 = a.shape
        h = fc1b_ref[...]                                   # (1, H)
        for l in range(Lf):
            h = h + jnp.dot(a[l:l + 1, :],
                            fc1w_ref[l * C3:(l + 1) * C3, :],
                            preferred_element_type=jnp.float32)
        h = jnp.maximum(h, 0.0)
        logits = jnp.dot(h, fc2w_ref[...],
                         preferred_element_type=jnp.float32) + fc2b_ref[...]
        # LogSoftmax(dim=1), numerically stable.
        m = jnp.max(logits, axis=-1, keepdims=True)
        lse = jnp.log(jnp.sum(jnp.exp(logits - m), axis=-1, keepdims=True)) + m
        o_ref[b:b + 1, :] = logits - lse


# ------------------------------ JAX wrappers ---------------------------------

def prepare_params(p):
    """One-time weight prep (outside the jitted forward).

    - conv weights (Cout, Cin, K) -> (K, Cin, Cout) so conv = sum_k x_shift @ w[k]
    - fc1 (H, F) -> (F, H) with rows permuted from PyTorch's NCW flatten order
      (f = c*Lf + l) to channels-last flatten order (g = l*C + c), absorbing
      torch's x.view(B, -1) so the kernel never transposes activations.
    - fc2 (Cls, H) -> (H, Cls); biases reshaped to (1, N) rows.
    """
    C3 = p["w3"].shape[0]
    H, F = p["fc1_w"].shape
    Lf = F // C3
    fc1_w = jnp.transpose(p["fc1_w"].reshape(H, C3, Lf), (2, 1, 0)).reshape(Lf * C3, H)
    return dict(
        w1=jnp.transpose(p["w1"], (2, 1, 0)), b1=p["b1"].reshape(1, -1),
        w2=jnp.transpose(p["w2"], (2, 1, 0)), b2=p["b2"].reshape(1, -1),
        w3=jnp.transpose(p["w3"], (2, 1, 0)), b3=p["b3"].reshape(1, -1),
        fc1_w=fc1_w, fc1_b=p["fc1_b"].reshape(1, -1),
        fc2_w=p["fc2_w"].T, fc2_b=p["fc2_b"].reshape(1, -1),
    )


@jax.jit
def conv_model_forward(x_ncw, pp):
    """Full ConvModel.forward. x_ncw: (B, num_features, max_seq), NCW like PyTorch."""
    x_blc = jnp.transpose(x_ncw, (0, 2, 1)).astype(jnp.float32)  # (B, L, Cin)
    B, L, _ = x_blc.shape
    K1, _, C1 = pp["w1"].shape
    K2, _, C2 = pp["w2"].shape
    K3, _, C3 = pp["w3"].shape
    L1 = L - K1 + 1            # conv1 output length (pre-pool)
    L2 = L1 // 2 - K2 + 1      # conv2 output length
    L3 = L2 // 2 - K3 + 1      # conv3 output length
    Cls = pp["fc2_w"].shape[1]
    # Single fused kernel, no grid: total footprint is a few tens of KiB, far
    # under VMEM on every TPU generation (incl. v7x's 64 MiB). If B ever grows
    # beyond toy scale, add a batch grid axis with
    # dimension_semantics=("parallel",) to shard across v7x's two TensorCores.
    return pl.pallas_call(
        _fused_forward_kernel,
        out_shape=jax.ShapeDtypeStruct((B, Cls), jnp.float32),
        in_specs=[_VMEM_SPEC] * 11,
        out_specs=_VMEM_SPEC,
        scratch_shapes=[
            pltpu.VMEM((L1, C1), jnp.float32),   # conv1 out, pooled in-place
            pltpu.VMEM((L2, C2), jnp.float32),   # conv2 out
            pltpu.VMEM((L3, C3), jnp.float32),   # conv3 out
        ],
    )(x_blc, pp["w1"], pp["b1"], pp["w2"], pp["b2"], pp["w3"], pp["b3"],
      pp["fc1_w"], pp["fc1_b"], pp["fc2_w"], pp["fc2_b"])


# --------------------------- pure-JAX reference ------------------------------

def ref_forward(x_ncw, p):
    def conv(x, w, b):
        y = jax.lax.conv_general_dilated(
            x, w, window_strides=(1,), padding="VALID",
            dimension_numbers=("NCH", "OIH", "NCH"))
        return jax.nn.relu(y + b[None, :, None])

    def pool(x):
        B, C, L = x.shape
        P = L // 2
        return x[:, :, :2 * P].reshape(B, C, P, 2).max(axis=-1)

    x = pool(conv(x_ncw, p["w1"], p["b1"]))
    x = pool(conv(x, p["w2"], p["b2"]))
    x = pool(conv(x, p["w3"], p["b3"]))
    x = x.reshape(x.shape[0], -1)
    h = jax.nn.relu(x @ p["fc1_w"].T + p["fc1_b"])
    logits = h @ p["fc2_w"].T + p["fc2_b"]
    return jax.nn.log_softmax(logits, axis=1)


# ---------------------------------- main -------------------------------------

if __name__ == "__main__":
    params = dict(max_seq=32, num_features=4, out_ch1=8, kernel1=3,
                  out_ch2=8, kernel2=3, out_ch3=8, kernel3=3,
                  hidden_layer=32, num_classes=5)

    # Mirror ConvModel.__init__ length bookkeeping -> classifier input size.
    max_len = params["max_seq"]
    for k in (params["kernel1"], params["kernel2"], params["kernel3"]):
        n = (max_len - k) / 2.0
        max_len = n if int(n) == n else int(n) + 1
    flat_dim = int(params["out_ch3"] * max_len)

    key = jax.random.PRNGKey(0)
    ks = jax.random.split(key, 11)
    p = {
        "w1": 0.2 * jax.random.normal(ks[0], (params["out_ch1"], params["num_features"], params["kernel1"]), jnp.float32),
        "b1": 0.1 * jax.random.normal(ks[1], (params["out_ch1"],), jnp.float32),
        "w2": 0.2 * jax.random.normal(ks[2], (params["out_ch2"], params["out_ch1"], params["kernel2"]), jnp.float32),
        "b2": 0.1 * jax.random.normal(ks[3], (params["out_ch2"],), jnp.float32),
        "w3": 0.2 * jax.random.normal(ks[4], (params["out_ch3"], params["out_ch2"], params["kernel3"]), jnp.float32),
        "b3": 0.1 * jax.random.normal(ks[5], (params["out_ch3"],), jnp.float32),
        "fc1_w": 0.2 * jax.random.normal(ks[6], (params["hidden_layer"], flat_dim), jnp.float32),
        "fc1_b": 0.1 * jax.random.normal(ks[7], (params["hidden_layer"],), jnp.float32),
        "fc2_w": 0.2 * jax.random.normal(ks[8], (params["num_classes"], params["hidden_layer"]), jnp.float32),
        "fc2_b": 0.1 * jax.random.normal(ks[9], (params["num_classes"],), jnp.float32),
    }
    x = jax.random.normal(ks[10], (2, params["num_features"], params["max_seq"]), jnp.float32)

    pp = prepare_params(p)  # one-time weight reshapes, outside the forward

    out = jax.block_until_ready(conv_model_forward(x, pp))
    ref = jax.block_until_ready(ref_forward(x, p))

    assert out.shape == (2, params["num_classes"]), out.shape
    assert jnp.allclose(out, ref, atol=1e-4, rtol=1e-4), (out, ref)
    print("KERNEL_OK")
</pallas_src>

<mosaic_0001>
module attributes {stable_mosaic.version = 11 : i64} {
  func.func @_fused_forward_kernel(%arg0: memref<2x32x4xf32, #tpu.memory_space<vmem>>, %arg1: memref<3x4x8xf32, #tpu.memory_space<vmem>>, %arg2: memref<1x8xf32, #tpu.memory_space<vmem>>, %arg3: memref<3x8x8xf32, #tpu.memory_space<vmem>>, %arg4: memref<1x8xf32, #tpu.memory_space<vmem>>, %arg5: memref<3x8x8xf32, #tpu.memory_space<vmem>>, %arg6: memref<1x8xf32, #tpu.memory_space<vmem>>, %arg7: memref<16x32xf32, #tpu.memory_space<vmem>>, %arg8: memref<1x32xf32, #tpu.memory_space<vmem>>, %arg9: memref<32x5xf32, #tpu.memory_space<vmem>>, %arg10: memref<1x5xf32, #tpu.memory_space<vmem>>, %arg11: memref<2x5xf32, #tpu.memory_space<vmem>>, %arg12: memref<30x8xf32, #tpu.memory_space<vmem>>, %arg13: memref<13x8xf32, #tpu.memory_space<vmem>>, %arg14: memref<4x8xf32, #tpu.memory_space<vmem>>) attributes {dimension_semantics = [], scalar_prefetch = 0 : i64, scratch_operands = 3 : i64, tpu.core_type = #tpu.core_type<tc>} {
    %c0 = arith.constant 0 : index
    %c0_0 = arith.constant 0 : index
    %c0_1 = arith.constant 0 : index
    %0 = vector.load %arg0[%c0, %c0_0, %c0_1] : memref<2x32x4xf32, #tpu.memory_space<vmem>>, vector<1x32x4xf32>
    %1 = vector.shape_cast %0 : vector<1x32x4xf32> to vector<32x4xf32>
    %2 = vector.extract_strided_slice %1 {offsets = [0, 0], sizes = [30, 4], strides = [1, 1]} : vector<32x4xf32> to vector<30x4xf32>
    %c0_2 = arith.constant 0 : index
    %c0_3 = arith.constant 0 : index
    %c0_4 = arith.constant 0 : index
    %3 = vector.load %arg1[%c0_2, %c0_3, %c0_4] : memref<3x4x8xf32, #tpu.memory_space<vmem>>, vector<1x4x8xf32>
    %4 = vector.shape_cast %3 : vector<1x4x8xf32> to vector<4x8xf32>
    %cst = arith.constant dense<0.000000e+00> : vector<30x8xf32>
    %5 = tpu.matmul %2, %4, %cst {dimension_numbers = #tpu.dot_dimension_numbers<[1], [0], [0], [1], [0, 0, 1, 1], [], []>} : vector<30x4xf32>, vector<4x8xf32>, vector<30x8xf32> -> vector<30x8xf32>
    %6 = vector.extract_strided_slice %1 {offsets = [1, 0], sizes = [30, 4], strides = [1, 1]} : vector<32x4xf32> to vector<30x4xf32>
    %c1 = arith.constant 1 : index
    %c0_5 = arith.constant 0 : index
    %c0_6 = arith.constant 0 : index
    %7 = vector.load %arg1[%c1, %c0_5, %c0_6] : memref<3x4x8xf32, #tpu.memory_space<vmem>>, vector<1x4x8xf32>
    %8 = vector.shape_cast %7 : vector<1x4x8xf32> to vector<4x8xf32>
    %cst_7 = arith.constant dense<0.000000e+00> : vector<30x8xf32>
    %9 = tpu.matmul %6, %8, %cst_7 {dimension_numbers = #tpu.dot_dimension_numbers<[1], [0], [0], [1], [0, 0, 1, 1], [], []>} : vector<30x4xf32>, vector<4x8xf32>, vector<30x8xf32> -> vector<30x8xf32>
    %10 = arith.addf %5, %9 : vector<30x8xf32>
    %11 = vector.extract_strided_slice %1 {offsets = [2, 0], sizes = [30, 4], strides = [1, 1]} : vector<32x4xf32> to vector<30x4xf32>
    %c2 = arith.constant 2 : index
    %c0_8 = arith.constant 0 : index
    %c0_9 = arith.constant 0 : index
    %12 = vector.load %arg1[%c2, %c0_8, %c0_9] : memref<3x4x8xf32, #tpu.memory_space<vmem>>, vector<1x4x8xf32>
    %13 = vector.shape_cast %12 : vector<1x4x8xf32> to vector<4x8xf32>
    %cst_10 = arith.constant dense<0.000000e+00> : vector<30x8xf32>
    %14 = tpu.matmul %11, %13, %cst_10 {dimension_numbers = #tpu.dot_dimension_numbers<[1], [0], [0], [1], [0, 0, 1, 1], [], []>} : vector<30x4xf32>, vector<4x8xf32>, vector<30x8xf32> -> vector<30x8xf32>
    %15 = arith.addf %10, %14 : vector<30x8xf32>
    %c0_11 = arith.constant 0 : index
    %c0_12 = arith.constant 0 : index
    %16 = vector.load %arg2[%c0_11, %c0_12] : memref<1x8xf32, #tpu.memory_space<vmem>>, vector<1x8xf32>
    %17 = vector.broadcast %16 : vector<1x8xf32> to vector<30x8xf32>
    %18 = arith.addf %15, %17 : vector<30x8xf32>
    %cst_13 = arith.constant 0.000000e+00 : f32
    %19 = vector.broadcast %cst_13 : f32 to vector<30x8xf32>
    %20 = arith.maximumf %18, %19 : vector<30x8xf32>
    %c0_14 = arith.constant 0 : index
    %c0_15 = arith.constant 0 : index
    %21 = vector.load %arg12[%c0_14, %c0_15] : memref<30x8xf32, #tpu.memory_space<vmem>>, vector<30x8xf32>
    tpu.vector_store %arg12[%c0_14, %c0_15], %20 {strides = array<i32>} : memref<30x8xf32, #tpu.memory_space<vmem>>, vector<30x8xf32>,
    %c0_16 = arith.constant 0 : index
    %c0_17 = arith.constant 0 : index
    %22 = tpu.strided_load %arg12[%c0_16, %c0_17] {strides = array<i32: 2, 1>} : memref<30x8xf32, #tpu.memory_space<vmem>>, vector<15x8xf32>
    %c1_18 = arith.constant 1 : index
    %c0_19 = arith.constant 0 : index
    %23 = tpu.strided_load %arg12[%c1_18, %c0_19] {strides = array<i32: 2, 1>} : memref<30x8xf32, #tpu.memory_space<vmem>>, vector<15x8xf32>
    %24 = arith.maximumf %22, %23 : vector<15x8xf32>
    %25 = vector.extract_strided_slice %24 {offsets = [0, 0], sizes = [13, 8], strides = [1, 1]} : vector<15x8xf32> to vector<13x8xf32>
    %c0_20 = arith.constant 0 : index
    %c0_21 = arith.constant 0 : index
    %c0_22 = arith.constant 0 : index
    %26 = vector.load %arg3[%c0_20, %c0_21, %c0_22] : memref<3x8x8xf32, #tpu.memory_space<vmem>>, vector<1x8x8xf32>
    %27 = vector.shape_cast %26 : vector<1x8x8xf32> to vector<8x8xf32>
    %cst_23 = arith.constant dense<0.000000e+00> : vector<13x8xf32>
    %28 = tpu.matmul %25, %27, %cst_23 {dimension_numbers = #tpu.dot_dimension_numbers<[1], [0], [0], [1], [0, 0, 1, 1], [], []>} : vector<13x8xf32>, vector<8x8xf32>, vector<13x8xf32> -> vector<13x8xf32>
    %29 = vector.extract_strided_slice %24 {offsets = [1, 0], sizes = [13, 8], strides = [1, 1]} : vector<15x8xf32> to vector<13x8xf32>
    %c1_24 = arith.constant 1 : index
    %c0_25 = arith.constant 0 : index
    %c0_26 = arith.constant 0 : index
    %30 = vector.load %arg3[%c1_24, %c0_25, %c0_26] : memref<3x8x8xf32, #tpu.memory_space<vmem>>, vector<1x8x8xf32>
    %31 = vector.shape_cast %30 : vector<1x8x8xf32> to vector<8x8xf32>
    %cst_27 = arith.constant dense<0.000000e+00> : vector<13x8xf32>
    %32 = tpu.matmul %29, %31, %cst_27 {dimension_numbers = #tpu.dot_dimension_numbers<[1], [0], [0], [1], [0, 0, 1, 1], [], []>} : vector<13x8xf32>, vector<8x8xf32>, vector<13x8xf32> -> vector<13x8xf32>
    %33 = arith.addf %28, %32 : vector<13x8xf32>
    %34 = vector.extract_strided_slice %24 {offsets = [2, 0], sizes = [13, 8], strides = [1, 1]} : vector<15x8xf32> to vector<13x8xf32>
    %c2_28 = arith.constant 2 : index
    %c0_29 = arith.constant 0 : index
    %c0_30 = arith.constant 0 : index
    %35 = vector.load %arg3[%c2_28, %c0_29, %c0_30] : memref<3x8x8xf32, #tpu.memory_space<vmem>>, vector<1x8x8xf32>
    %36 = vector.shape_cast %35 : vector<1x8x8xf32> to vector<8x8xf32>
    %cst_31 = arith.constant dense<0.000000e+00> : vector<13x8xf32>
    %37 = tpu.matmul %34, %36, %cst_31 {dimension_numbers = #tpu.dot_dimension_numbers<[1], [0], [0], [1], [0, 0, 1, 1], [], []>} : vector<13x8xf32>, vector<8x8xf32>, vector<13x8xf32> -> vector<13x8xf32>
    %38 = arith.addf %33, %37 : vector<13x8xf32>
    %c0_32 = arith.constant 0 : index
    %c0_33 = arith.constant 0 : index
    %39 = vector.load %arg4[%c0_32, %c0_33] : memref<1x8xf32, #tpu.memory_space<vmem>>, vector<1x8xf32>
    %40 = vector.broadcast %39 : vector<1x8xf32> to vector<13x8xf32>
    %41 = arith.addf %38, %40 : vector<13x8xf32>
    %cst_34 = arith.constant 0.000000e+00 : f32
    %42 = vector.broadcast %cst_34 : f32 to vector<13x8xf32>
    %43 = arith.maximumf %41, %42 : vector<13x8xf32>
    %c0_35 = arith.constant 0 : index
    %c0_36 = arith.constant 0 : index
    %44 = vector.load %arg13[%c0_35, %c0_36] : memref<13x8xf32, #tpu.memory_space<vmem>>, vector<13x8xf32>
    tpu.vector_store %arg13[%c0_35, %c0_36], %43 {strides = array<i32>} : memref<13x8xf32, #tpu.memory_space<vmem>>, vector<13x8xf32>,
    %c0_37 = arith.constant 0 : index
    %c0_38 = arith.constant 0 : index
    %45 = tpu.strided_load %arg13[%c0_37, %c0_38] {strides = array<i32: 2, 1>} : memref<13x8xf32, #tpu.memory_space<vmem>>, vector<6x8xf32>
    %c1_39 = arith.constant 1 : index
    %c0_40 = arith.constant 0 : index
    %46 = tpu.strided_load %arg13[%c1_39, %c0_40] {strides = array<i32: 2, 1>} : memref<13x8xf32, #tpu.memory_space<vmem>>, vector<6x8xf32>
    %47 = arith.maximumf %45, %46 : vector<6x8xf32>
    %48 = vector.extract_strided_slice %47 {offsets = [0, 0], sizes = [4, 8], strides = [1, 1]} : vector<6x8xf32> to vector<4x8xf32>
    %c0_41 = arith.constant 0 : index
    %c0_42 = arith.constant 0 : index
    %c0_43 = arith.constant 0 : index
    %49 = vector.load %arg5[%c0_41, %c0_42, %c0_43] : memref<3x8x8xf32, #tpu.memory_space<vmem>>, vector<1x8x8xf32>
    %50 = vector.shape_cast %49 : vector<1x8x8xf32> to vector<8x8xf32>
    %cst_44 = arith.constant dense<0.000000e+00> : vector<4x8xf32>
    %51 = tpu.matmul %48, %50, %cst_44 {dimension_numbers = #tpu.dot_dimension_numbers<[1], [0], [0], [1], [0, 0, 1, 1], [], []>} : vector<4x8xf32>, vector<8x8xf32>, vector<4x8xf32> -> vector<4x8xf32>
    %52 = vector.extract_strided_slice %47 {offsets = [1, 0], sizes = [4, 8], strides = [1, 1]} : vector<6x8xf32> to vector<4x8xf32>
    %c1_45 = arith.constant 1 : index
    %c0_46 = arith.constant 0 : index
    %c0_47 = arith.constant 0 : index
    %53 = vector.load %arg5[%c1_45, %c0_46, %c0_47] : memref<3x8x8xf32, #tpu.memory_space<vmem>>, vector<1x8x8xf32>
    %54 = vector.shape_cast %53 : vector<1x8x8xf32> to vector<8x8xf32>
    %cst_48 = arith.constant dense<0.000000e+00> : vector<4x8xf32>
    %55 = tpu.matmul %52, %54, %cst_48 {dimension_numbers = #tpu.dot_dimension_numbers<[1], [0], [0], [1], [0, 0, 1, 1], [], []>} : vector<4x8xf32>, vector<8x8xf32>, vector<4x8xf32> -> vector<4x8xf32>
    %56 = arith.addf %51, %55 : vector<4x8xf32>
    %57 = vector.extract_strided_slice %47 {offsets = [2, 0], sizes = [4, 8], strides = [1, 1]} : vector<6x8xf32> to vector<4x8xf32>
    %c2_49 = arith.constant 2 : index
    %c0_50 = arith.constant 0 : index
    %c0_51 = arith.constant 0 : index
    %58 = vector.load %arg5[%c2_49, %c0_50, %c0_51] : memref<3x8x8xf32, #tpu.memory_space<vmem>>, vector<1x8x8xf32>
    %59 = vector.shape_cast %58 : vector<1x8x8xf32> to vector<8x8xf32>
    %cst_52 = arith.constant dense<0.000000e+00> : vector<4x8xf32>
    %60 = tpu.matmul %57, %59, %cst_52 {dimension_numbers = #tpu.dot_dimension_numbers<[1], [0], [0], [1], [0, 0, 1, 1], [], []>} : vector<4x8xf32>, vector<8x8xf32>, vector<4x8xf32> -> vector<4x8xf32>
    %61 = arith.addf %56, %60 : vector<4x8xf32>
    %c0_53 = arith.constant 0 : index
    %c0_54 = arith.constant 0 : index
    %62 = vector.load %arg6[%c0_53, %c0_54] : memref<1x8xf32, #tpu.memory_space<vmem>>, vector<1x8xf32>
    %63 = vector.broadcast %62 : vector<1x8xf32> to vector<4x8xf32>
    %64 = arith.addf %61, %63 : vector<4x8xf32>
    %cst_55 = arith.constant 0.000000e+00 : f32
    %65 = vector.broadcast %cst_55 : f32 to vector<4x8xf32>
    %66 = arith.maximumf %64, %65 : vector<4x8xf32>
    %c0_56 = arith.constant 0 : index
    %c0_57 = arith.constant 0 : index
    %67 = vector.load %arg14[%c0_56, %c0_57] : memref<4x8xf32, #tpu.memory_space<vmem>>, vector<4x8xf32>
    tpu.vector_store %arg14[%c0_56, %c0_57], %66 {strides = array<i32>} : memref<4x8xf32, #tpu.memory_space<vmem>>, vector<4x8xf32>,
    %c0_58 = arith.constant 0 : index
    %c0_59 = arith.constant 0 : index
    %68 = tpu.strided_load %arg14[%c0_58, %c0_59] {strides = array<i32: 2, 1>} : memref<4x8xf32, #tpu.memory_space<vmem>>, vector<2x8xf32>
    %c1_60 = arith.constant 1 : index
    %c0_61 = arith.constant 0 : index
    %69 = tpu.strided_load %arg14[%c1_60, %c0_61] {strides = array<i32: 2, 1>} : memref<4x8xf32, #tpu.memory_space<vmem>>, vector<2x8xf32>
    %70 = arith.maximumf %68, %69 : vector<2x8xf32>
    %c0_62 = arith.constant 0 : index
    %c0_63 = arith.constant 0 : index
    %71 = vector.load %arg8[%c0_62, %c0_63] : memref<1x32xf32, #tpu.memory_space<vmem>>, vector<1x32xf32>
    %72 = vector.extract_strided_slice %70 {offsets = [0, 0], sizes = [1, 8], strides = [1, 1]} : vector<2x8xf32> to vector<1x8xf32>
    %c0_64 = arith.constant 0 : index
    %c0_65 = arith.constant 0 : index
    %73 = vector.load %arg7[%c0_64, %c0_65] : memref<16x32xf32, #tpu.memory_space<vmem>>, vector<8x32xf32>
    %cst_66 = arith.constant dense<0.000000e+00> : vector<1x32xf32>
    %74 = tpu.matmul %72, %73, %cst_66 {dimension_numbers = #tpu.dot_dimension_numbers<[1], [0], [0], [1], [0, 0, 1, 1], [], []>} : vector<1x8xf32>, vector<8x32xf32>, vector<1x32xf32> -> vector<1x32xf32>
    %75 = arith.addf %71, %74 : vector<1x32xf32>
    %76 = vector.extract_strided_slice %70 {offsets = [1, 0], sizes = [1, 8], strides = [1, 1]} : vector<2x8xf32> to vector<1x8xf32>
    %c8 = arith.constant 8 : index
    %c0_67 = arith.constant 0 : index
    %77 = vector.load %arg7[%c8, %c0_67] : memref<16x32xf32, #tpu.memory_space<vmem>>, vector<8x32xf32>
    %cst_68 = arith.constant dense<0.000000e+00> : vector<1x32xf32>
    %78 = tpu.matmul %76, %77, %cst_68 {dimension_numbers = #tpu.dot_dimension_numbers<[1], [0], [0], [1], [0, 0, 1, 1], [], []>} : vector<1x8xf32>, vector<8x32xf32>, vector<1x32xf32> -> vector<1x32xf32>
    %79 = arith.addf %75, %78 : vector<1x32xf32>
    %cst_69 = arith.constant 0.000000e+00 : f32
    %80 = vector.broadcast %cst_69 : f32 to vector<1x32xf32>
    %81 = arith.maximumf %79, %80 : vector<1x32xf32>
    %c0_70 = arith.constant 0 : index
    %c0_71 = arith.constant 0 : index
    %82 = vector.load %arg9[%c0_70, %c0_71] : memref<32x5xf32, #tpu.memory_space<vmem>>, vector<32x5xf32>
    %cst_72 = arith.constant dense<0.000000e+00> : vector<1x5xf32>
    %83 = tpu.matmul %81, %82, %cst_72 {dimension_numbers = #tpu.dot_dimension_numbers<[1], [0], [0], [1], [0, 0, 1, 1], [], []>} : vector<1x32xf32>, vector<32x5xf32>, vector<1x5xf32> -> vector<1x5xf32>
    %c0_73 = arith.constant 0 : index
    %c0_74 = arith.constant 0 : index
    %84 = vector.load %arg10[%c0_73, %c0_74] : memref<1x5xf32, #tpu.memory_space<vmem>>, vector<1x5xf32>
    %85 = arith.addf %83, %84 : vector<1x5xf32>
    %cst_75 = arith.constant dense<0xFF800000> : vector<1xf32>
    %86 = vector.multi_reduction <maximumf>, %85, %cst_75 [1] : vector<1x5xf32> to vector<1xf32>
    %87 = vector.shape_cast %86 : vector<1xf32> to vector<1x1xf32>
    %88 = vector.broadcast %87 : vector<1x1xf32> to vector<1x5xf32>
    %89 = arith.subf %85, %88 : vector<1x5xf32>
    %90 = math.exp %89 : vector<1x5xf32>
    %cst_76 = arith.constant dense<0.000000e+00> : vector<1xf32>
    %91 = vector.multi_reduction <add>, %90, %cst_76 [1] : vector<1x5xf32> to vector<1xf32>
    %92 = vector.shape_cast %91 : vector<1xf32> to vector<1x1xf32>
    %93 = math.log %92 : vector<1x1xf32>
    %94 = arith.addf %93, %87 : vector<1x1xf32>
    %95 = vector.broadcast %94 : vector<1x1xf32> to vector<1x5xf32>
    %96 = arith.subf %85, %95 : vector<1x5xf32>
    %c0_77 = arith.constant 0 : index
    %c0_78 = arith.constant 0 : index
    %97 = vector.load %arg11[%c0_77, %c0_78] : memref<2x5xf32, #tpu.memory_space<vmem>>, vector<1x5xf32>
    tpu.vector_store %arg11[%c0_77, %c0_78], %96 {strides = array<i32>} : memref<2x5xf32, #tpu.memory_space<vmem>>, vector<1x5xf32>,
    %c1_79 = arith.constant 1 : index
    %c0_80 = arith.constant 0 : index
    %c0_81 = arith.constant 0 : index
    %98 = vector.load %arg0[%c1_79, %c0_80, %c0_81] : memref<2x32x4xf32, #tpu.memory_space<vmem>>, vector<1x32x4xf32>
    %99 = vector.shape_cast %98 : vector<1x32x4xf32> to vector<32x4xf32>
    %100 = vector.extract_strided_slice %99 {offsets = [0, 0], sizes = [30, 4], strides = [1, 1]} : vector<32x4xf32> to vector<30x4xf32>
    %c0_82 = arith.constant 0 : index
    %c0_83 = arith.constant 0 : index
    %c0_84 = arith.constant 0 : index
    %101 = vector.load %arg1[%c0_82, %c0_83, %c0_84] : memref<3x4x8xf32, #tpu.memory_space<vmem>>, vector<1x4x8xf32>
    %102 = vector.shape_cast %101 : vector<1x4x8xf32> to vector<4x8xf32>
    %cst_85 = arith.constant dense<0.000000e+00> : vector<30x8xf32>
    %103 = tpu.matmul %100, %102, %cst_85 {dimension_numbers = #tpu.dot_dimension_numbers<[1], [0], [0], [1], [0, 0, 1, 1], [], []>} : vector<30x4xf32>, vector<4x8xf32>, vector<30x8xf32> -> vector<30x8xf32>
    %104 = vector.extract_strided_slice %99 {offsets = [1, 0], sizes = [30, 4], strides = [1, 1]} : vector<32x4xf32> to vector<30x4xf32>
    %c1_86 = arith.constant 1 : index
    %c0_87 = arith.constant 0 : index
    %c0_88 = arith.constant 0 : index
    %105 = vector.load %arg1[%c1_86, %c0_87, %c0_88] : memref<3x4x8xf32, #tpu.memory_space<vmem>>, vector<1x4x8xf32>
    %106 = vector.shape_cast %105 : vector<1x4x8xf32> to vector<4x8xf32>
    %cst_89 = arith.constant dense<0.000000e+00> : vector<30x8xf32>
    %107 = tpu.matmul %104, %106, %cst_89 {dimension_numbers = #tpu.dot_dimension_numbers<[1], [0], [0], [1], [0, 0, 1, 1], [], []>} : vector<30x4xf32>, vector<4x8xf32>, vector<30x8xf32> -> vector<30x8xf32>
    %108 = arith.addf %103, %107 : vector<30x8xf32>
    %109 = vector.extract_strided_slice %99 {offsets = [2, 0], sizes = [30, 4], strides = [1, 1]} : vector<32x4xf32> to vector<30x4xf32>
    %c2_90 = arith.constant 2 : index
    %c0_91 = arith.constant 0 : index
    %c0_92 = arith.constant 0 : index
    %110 = vector.load %arg1[%c2_90, %c0_91, %c0_92] : memref<3x4x8xf32, #tpu.memory_space<vmem>>, vector<1x4x8xf32>
    %111 = vector.shape_cast %110 : vector<1x4x8xf32> to vector<4x8xf32>
    %cst_93 = arith.constant dense<0.000000e+00> : vector<30x8xf32>
    %112 = tpu.matmul %109, %111, %cst_93 {dimension_numbers = #tpu.dot_dimension_numbers<[1], [0], [0], [1], [0, 0, 1, 1], [], []>} : vector<30x4xf32>, vector<4x8xf32>, vector<30x8xf32> -> vector<30x8xf32>
    %113 = arith.addf %108, %112 : vector<30x8xf32>
    %c0_94 = arith.constant 0 : index
    %c0_95 = arith.constant 0 : index
    %114 = vector.load %arg2[%c0_94, %c0_95] : memref<1x8xf32, #tpu.memory_space<vmem>>, vector<1x8xf32>
    %115 = vector.broadcast %114 : vector<1x8xf32> to vector<30x8xf32>
    %116 = arith.addf %113, %115 : vector<30x8xf32>
    %cst_96 = arith.constant 0.000000e+00 : f32
    %117 = vector.broadcast %cst_96 : f32 to vector<30x8xf32>
    %118 = arith.maximumf %116, %117 : vector<30x8xf32>
    %c0_97 = arith.constant 0 : index
    %c0_98 = arith.constant 0 : index
    %119 = vector.load %arg12[%c0_97, %c0_98] : memref<30x8xf32, #tpu.memory_space<vmem>>, vector<30x8xf32>
    tpu.vector_store %arg12[%c0_97, %c0_98], %118 {strides = array<i32>} : memref<30x8xf32, #tpu.memory_space<vmem>>, vector<30x8xf32>,
    %c0_99 = arith.constant 0 : index
    %c0_100 = arith.constant 0 : index
    %120 = tpu.strided_load %arg12[%c0_99, %c0_100] {strides = array<i32: 2, 1>} : memref<30x8xf32, #tpu.memory_space<vmem>>, vector<15x8xf32>
    %c1_101 = arith.constant 1 : index
    %c0_102 = arith.constant 0 : index
    %121 = tpu.strided_load %arg12[%c1_101, %c0_102] {strides = array<i32: 2, 1>} : memref<30x8xf32, #tpu.memory_space<vmem>>, vector<15x8xf32>
    %122 = arith.maximumf %120, %121 : vector<15x8xf32>
    %123 = vector.extract_strided_slice %122 {offsets = [0, 0], sizes = [13, 8], strides = [1, 1]} : vector<15x8xf32> to vector<13x8xf32>
    %c0_103 = arith.constant 0 : index
    %c0_104 = arith.constant 0 : index
    %c0_105 = arith.constant 0 : index
    %124 = vector.load %arg3[%c0_103, %c0_104, %c0_105] : memref<3x8x8xf32, #tpu.memory_space<vmem>>, vector<1x8x8xf32>
    %125 = vector.shape_cast %124 : vector<1x8x8xf32> to vector<8x8xf32>
    %cst_106 = arith.constant dense<0.000000e+00> : vector<13x8xf32>
    %126 = tpu.matmul %123, %125, %cst_106 {dimension_numbers = #tpu.dot_dimension_numbers<[1], [0], [0], [1], [0, 0, 1, 1], [], []>} : vector<13x8xf32>, vector<8x8xf32>, vector<13x8xf32> -> vector<13x8xf32>
    %127 = vector.extract_strided_slice %122 {offsets = [1, 0], sizes = [13, 8], strides = [1, 1]} : vector<15x8xf32> to vector<13x8xf32>
    %c1_107 = arith.constant 1 : index
    %c0_108 = arith.constant 0 : index
    %c0_109 = arith.constant 0 : index
    %128 = vector.load %arg3[%c1_107, %c0_108, %c0_109] : memref<3x8x8xf32, #tpu.memory_space<vmem>>, vector<1x8x8xf32>
    %129 = vector.shape_cast %128 : vector<1x8x8xf32> to vector<8x8xf32>
    %cst_110 = arith.constant dense<0.000000e+00> : vector<13x8xf32>
    %130 = tpu.matmul %127, %129, %cst_110 {dimension_numbers = #tpu.dot_dimension_numbers<[1], [0], [0], [1], [0, 0, 1, 1], [], []>} : vector<13x8xf32>, vector<8x8xf32>, vector<13x8xf32> -> vector<13x8xf32>
    %131 = arith.addf %126, %130 : vector<13x8xf32>
    %132 = vector.extract_strided_slice %122 {offsets = [2, 0], sizes = [13, 8], strides = [1, 1]} : vector<15x8xf32> to vector<13x8xf32>
    %c2_111 = arith.constant 2 : index
    %c0_112 = arith.constant 0 : index
    %c0_113 = arith.constant 0 : index
    %133 = vector.load %arg3[%c2_111, %c0_112, %c0_113] : memref<3x8x8xf32, #tpu.memory_space<vmem>>, vector<1x8x8xf32>
    %134 = vector.shape_cast %133 : vector<1x8x8xf32> to vector<8x8xf32>
    %cst_114 = arith.constant dense<0.000000e+00> : vector<13x8xf32>
    %135 = tpu.matmul %132, %134, %cst_114 {dimension_numbers = #tpu.dot_dimension_numbers<[1], [0], [0], [1], [0, 0, 1, 1], [], []>} : vector<13x8xf32>, vector<8x8xf32>, vector<13x8xf32> -> vector<13x8xf32>
    %136 = arith.addf %131, %135 : vector<13x8xf32>
    %c0_115 = arith.constant 0 : index
    %c0_116 = arith.constant 0 : index
    %137 = vector.load %arg4[%c0_115, %c0_116] : memref<1x8xf32, #tpu.memory_space<vmem>>, vector<1x8xf32>
    %138 = vector.broadcast %137 : vector<1x8xf32> to vector<13x8xf32>
    %139 = arith.addf %136, %138 : vector<13x8xf32>
    %cst_117 = arith.constant 0.000000e+00 : f32
    %140 = vector.broadcast %cst_117 : f32 to vector<13x8xf32>
    %141 = arith.maximumf %139, %140 : vector<13x8xf32>
    %c0_118 = arith.constant 0 : index
    %c0_119 = arith.constant 0 : index
    %142 = vector.load %arg13[%c0_118, %c0_119] : memref<13x8xf32, #tpu.memory_space<vmem>>, vector<13x8xf32>
    tpu.vector_store %arg13[%c0_118, %c0_119], %141 {strides = array<i32>} : memref<13x8xf32, #tpu.memory_space<vmem>>, vector<13x8xf32>,
    %c0_120 = arith.constant 0 : index
    %c0_121 = arith.constant 0 : index
    %143 = tpu.strided_load %arg13[%c0_120, %c0_121] {strides = array<i32: 2, 1>} : memref<13x8xf32, #tpu.memory_space<vmem>>, vector<6x8xf32>
    %c1_122 = arith.constant 1 : index
    %c0_123 = arith.constant 0 : index
    %144 = tpu.strided_load %arg13[%c1_122, %c0_123] {strides = array<i32: 2, 1>} : memref<13x8xf32, #tpu.memory_space<vmem>>, vector<6x8xf32>
    %145 = arith.maximumf %143, %144 : vector<6x8xf32>
    %146 = vector.extract_strided_slice %145 {offsets = [0, 0], sizes = [4, 8], strides = [1, 1]} : vector<6x8xf32> to vector<4x8xf32>
    %c0_124 = arith.constant 0 : index
    %c0_125 = arith.constant 0 : index
    %c0_126 = arith.constant 0 : index
    %147 = vector.load %arg5[%c0_124, %c0_125, %c0_126] : memref<3x8x8xf32, #tpu.memory_space<vmem>>, vector<1x8x8xf32>
    %148 = vector.shape_cast %147 : vector<1x8x8xf32> to vector<8x8xf32>
    %cst_127 = arith.constant dense<0.000000e+00> : vector<4x8xf32>
    %149 = tpu.matmul %146, %148, %cst_127 {dimension_numbers = #tpu.dot_dimension_numbers<[1], [0], [0], [1], [0, 0, 1, 1], [], []>} : vector<4x8xf32>, vector<8x8xf32>, vector<4x8xf32> -> vector<4x8xf32>
    %150 = vector.extract_strided_slice %145 {offsets = [1, 0], sizes = [4, 8], strides = [1, 1]} : vector<6x8xf32> to vector<4x8xf32>
    %c1_128 = arith.constant 1 : index
    %c0_129 = arith.constant 0 : index
    %c0_130 = arith.constant 0 : index
    %151 = vector.load %arg5[%c1_128, %c0_129, %c0_130] : memref<3x8x8xf32, #tpu.memory_space<vmem>>, vector<1x8x8xf32>
    %152 = vector.shape_cast %151 : vector<1x8x8xf32> to vector<8x8xf32>
    %cst_131 = arith.constant dense<0.000000e+00> : vector<4x8xf32>
    %153 = tpu.matmul %150, %152, %cst_131 {dimension_numbers = #tpu.dot_dimension_numbers<[1], [0], [0], [1], [0, 0, 1, 1], [], []>} : vector<4x8xf32>, vector<8x8xf32>, vector<4x8xf32> -> vector<4x8xf32>
    %154 = arith.addf %149, %153 : vector<4x8xf32>
    %155 = vector.extract_strided_slice %145 {offsets = [2, 0], sizes = [4, 8], strides = [1, 1]} : vector<6x8xf32> to vector<4x8xf32>
    %c2_132 = arith.constant 2 : index
    %c0_133 = arith.constant 0 : index
    %c0_134 = arith.constant 0 : index
    %156 = vector.load %arg5[%c2_132, %c0_133, %c0_134] : memref<3x8x8xf32, #tpu.memory_space<vmem>>, vector<1x8x8xf32>
    %157 = vector.shape_cast %156 : vector<1x8x8xf32> to vector<8x8xf32>
    %cst_135 = arith.constant dense<0.000000e+00> : vector<4x8xf32>
    %158 = tpu.matmul %155, %157, %cst_135 {dimension_numbers = #tpu.dot_dimension_numbers<[1], [0], [0], [1], [0, 0, 1, 1], [], []>} : vector<4x8xf32>, vector<8x8xf32>, vector<4x8xf32> -> vector<4x8xf32>
    %159 = arith.addf %154, %158 : vector<4x8xf32>
    %c0_136 = arith.constant 0 : index
    %c0_137 = arith.constant 0 : index
    %160 = vector.load %arg6[%c0_136, %c0_137] : memref<1x8xf32, #tpu.memory_space<vmem>>, vector<1x8xf32>
    %161 = vector.broadcast %160 : vector<1x8xf32> to vector<4x8xf32>
    %162 = arith.addf %159, %161 : vector<4x8xf32>
    %cst_138 = arith.constant 0.000000e+00 : f32
    %163 = vector.broadcast %cst_138 : f32 to vector<4x8xf32>
    %164 = arith.maximumf %162, %163 : vector<4x8xf32>
    %c0_139 = arith.constant 0 : index
    %c0_140 = arith.constant 0 : index
    %165 = vector.load %arg14[%c0_139, %c0_140] : memref<4x8xf32, #tpu.memory_space<vmem>>, vector<4x8xf32>
    tpu.vector_store %arg14[%c0_139, %c0_140], %164 {strides = array<i32>} : memref<4x8xf32, #tpu.memory_space<vmem>>, vector<4x8xf32>,
    %c0_141 = arith.constant 0 : index
    %c0_142 = arith.constant 0 : index
    %166 = tpu.strided_load %arg14[%c0_141, %c0_142] {strides = array<i32: 2, 1>} : memref<4x8xf32, #tpu.memory_space<vmem>>, vector<2x8xf32>
    %c1_143 = arith.constant 1 : index
    %c0_144 = arith.constant 0 : index
    %167 = tpu.strided_load %arg14[%c1_143, %c0_144] {strides = array<i32: 2, 1>} : memref<4x8xf32, #tpu.memory_space<vmem>>, vector<2x8xf32>
    %168 = arith.maximumf %166, %167 : vector<2x8xf32>
    %c0_145 = arith.constant 0 : index
    %c0_146 = arith.constant 0 : index
    %169 = vector.load %arg8[%c0_145, %c0_146] : memref<1x32xf32, #tpu.memory_space<vmem>>, vector<1x32xf32>
    %170 = vector.extract_strided_slice %168 {offsets = [0, 0], sizes = [1, 8], strides = [1, 1]} : vector<2x8xf32> to vector<1x8xf32>
    %c0_147 = arith.constant 0 : index
    %c0_148 = arith.constant 0 : index
    %171 = vector.load %arg7[%c0_147, %c0_148] : memref<16x32xf32, #tpu.memory_space<vmem>>, vector<8x32xf32>
    %cst_149 = arith.constant dense<0.000000e+00> : vector<1x32xf32>
    %172 = tpu.matmul %170, %171, %cst_149 {dimension_numbers = #tpu.dot_dimension_numbers<[1], [0], [0], [1], [0, 0, 1, 1], [], []>} : vector<1x8xf32>, vector<8x32xf32>, vector<1x32xf32> -> vector<1x32xf32>
    %173 = arith.addf %169, %172 : vector<1x32xf32>
    %174 = vector.extract_strided_slice %168 {offsets = [1, 0], sizes = [1, 8], strides = [1, 1]} : vector<2x8xf32> to vector<1x8xf32>
    %c8_150 = arith.constant 8 : index
    %c0_151 = arith.constant 0 : index
    %175 = vector.load %arg7[%c8_150, %c0_151] : memref<16x32xf32, #tpu.memory_space<vmem>>, vector<8x32xf32>
    %cst_152 = arith.constant dense<0.000000e+00> : vector<1x32xf32>
    %176 = tpu.matmul %174, %175, %cst_152 {dimension_numbers = #tpu.dot_dimension_numbers<[1], [0], [0], [1], [0, 0, 1, 1], [], []>} : vector<1x8xf32>, vector<8x32xf32>, vector<1x32xf32> -> vector<1x32xf32>
    %177 = arith.addf %173, %176 : vector<1x32xf32>
    %cst_153 = arith.constant 0.000000e+00 : f32
    %178 = vector.broadcast %cst_153 : f32 to vector<1x32xf32>
    %179 = arith.maximumf %177, %178 : vector<1x32xf32>
    %c0_154 = arith.constant 0 : index
    %c0_155 = arith.constant 0 : index
    %180 = vector.load %arg9[%c0_154, %c0_155] : memref<32x5xf32, #tpu.memory_space<vmem>>, vector<32x5xf32>
    %cst_156 = arith.constant dense<0.000000e+00> : vector<1x5xf32>
    %181 = tpu.matmul %179, %180, %cst_156 {dimension_numbers = #tpu.dot_dimension_numbers<[1], [0], [0], [1], [0, 0, 1, 1], [], []>} : vector<1x32xf32>, vector<32x5xf32>, vector<1x5xf32> -> vector<1x5xf32>
    %c0_157 = arith.constant 0 : index
    %c0_158 = arith.constant 0 : index
    %182 = vector.load %arg10[%c0_157, %c0_158] : memref<1x5xf32, #tpu.memory_space<vmem>>, vector<1x5xf32>
    %183 = arith.addf %181, %182 : vector<1x5xf32>
    %cst_159 = arith.constant dense<0xFF800000> : vector<1xf32>
    %184 = vector.multi_reduction <maximumf>, %183, %cst_159 [1] : vector<1x5xf32> to vector<1xf32>
    %185 = vector.shape_cast %184 : vector<1xf32> to vector<1x1xf32>
    %186 = vector.broadcast %185 : vector<1x1xf32> to vector<1x5xf32>
    %187 = arith.subf %183, %186 : vector<1x5xf32>
    %188 = math.exp %187 : vector<1x5xf32>
    %cst_160 = arith.constant dense<0.000000e+00> : vector<1xf32>
    %189 = vector.multi_reduction <add>, %188, %cst_160 [1] : vector<1x5xf32> to vector<1xf32>
    %190 = vector.shape_cast %189 : vector<1xf32> to vector<1x1xf32>
    %191 = math.log %190 : vector<1x1xf32>
    %192 = arith.addf %191, %185 : vector<1x1xf32>
    %193 = vector.broadcast %192 : vector<1x1xf32> to vector<1x5xf32>
    %194 = arith.subf %183, %193 : vector<1x5xf32>
    %c1_161 = arith.constant 1 : index
    %c0_162 = arith.constant 0 : index
    %195 = vector.load %arg11[%c1_161, %c0_162] : memref<2x5xf32, #tpu.memory_space<vmem>>, vector<1x5xf32>
    tpu.vector_store %arg11[%c1_161, %c0_162], %194 {strides = array<i32>} : memref<2x5xf32, #tpu.memory_space<vmem>>, vector<1x5xf32>,
    return
  }
}

</mosaic_0001>

<bundles_post_ra>
// kernel: conv_model_forward.1
= control target key start
LH: loop header
LB: loop body
LE: loop exit
PB: predicated region body
PF: predicated region fallthrough
CT: control target
= control target key end

     0   :  { %vm67_vm0 = vcmask 1043456   ;;  %vm50_vm1 = vcmask 1046528   ;;  %vm58_vm2 = vcmask 31744   ;;  %s3013_s0 = inlined_call_operand.vmem [shape: f32[2,32,4], index: 0, kind: input, shape index: {}]   ;;  %s3014_s1 = inlined_call_operand.vmem [shape: f32[3,4,8], index: 1, kind: input, shape index: {}]   ;;  %s3015_s2 = inlined_call_operand.vmem [shape: f32[1,8], index: 2, kind: input, shape index: {}]   ;;  %s3016_s3 = inlined_call_operand.vmem [shape: f32[3,8,8], index: 3, kind: input, shape index: {}]   ;;  %s3017_s4 = inlined_call_operand.vmem [shape: f32[1,8], index: 4, kind: input, shape index: {}]   ;;  %s3018_s5 = inlined_call_operand.vmem [shape: f32[3,8,8], index: 5, kind: input, shape index: {}]   ;;  %s3019_s6 = inlined_call_operand.vmem [shape: f32[1,8], index: 6, kind: input, shape index: {}]   ;;  %s3020_s7 = inlined_call_operand.vmem [shape: f32[16,32], index: 7, kind: input, shape index: {}]   ;;  %s3021_s8 = inlined_call_operand.vmem [shape: f32[1,32], index: 8, kind: input, shape index: {}]   ;;  %s3022_s9 = inlined_call_operand.vmem [shape: f32[32,5], index: 9, kind: input, shape index: {}]   ;;  %s3023_s10 = inlined_call_operand.vmem [shape: f32[1,5], index: 10, kind: input, shape index: {}]   ;;  %s3024_s11 = inlined_call_operand.hbm [shape: f32[2,5], index: 11, kind: output, shape index: {}]  }
   0x1   :  { %v2251_v0 = vld [vmem:[%s3014_s1 + $0x4] sm:$0xf]  ;;  %v40_v2 = vld [vmem:[%s3013_s0 + $0x8] sm:$0xff]  ;;  %v43_v5 = vld [vmem:[%s3014_s1] sm:$0xf] }
   0x2   :  { %v39_v1 = vld [vmem:[%s3013_s0] sm:$0xff]  ;;  %2405 = vmatprep.subr.msk.mxu0 %vm67_vm0, %v2251_v0  ;;  %v52_v4 = vrot.slane %v40_v2, 1  ;;  %v41_v6 = vld [vmem:[%s3013_s0 + $0x10] sm:$0xff]  ;;  %v42_v8 = vld [vmem:[%s3013_s0 + $0x18] sm:$0xff] }
   0x3   :  { %v51_v3 = vrot.slane %v39_v1, 1  ;;  %2406 = vmatpush3.msk.msra.mxu0 %vm67_vm0, %v2251_v0  ;;  %v54_v7 = vrot.slane %v41_v6, 1  ;;  %v56_v10 = vrot.slane %v42_v8, 1 }
   0x4   :  { %2413 = vmatprep.subr.msk.mxu0 %vm67_vm0, %v43_v5 }
   0x5   :  { %v53_v9 = vsel %vm50_vm1, %v51_v3, %v52_v4 }
   0x6   :  { %16 = vsyncpa [#allocation6], 0  ;;  %2407 = vmatprep.mubr.msk.f32.mxu0 %vm58_vm2, %v53_v9  ;;  %v55_v11 = vsel %vm50_vm1, %v52_v4, %v54_v7  ;;  %v2262_v12 = vld [vmem:[%s3014_s1 + $0x8] sm:$0xf]  ;;  %v57_v13 = vsel %vm50_vm1, %v54_v7, %v56_v10  ;;  %v255_v14 = vrot.slane %v39_v1, 2  ;;  %v256_v15 = vrot.slane %v40_v2, 2 }
   0x7   :  { %2408 = vmatmul.mubr.msk.f32.vlgmr.msra.gmra.mrb[0].mxu0 %vm58_vm2, %v55_v11  ;;  %vm254_vm3 = vcmask 1045504   ;;  %v258_v16 = vrot.slane %v41_v6, 2  ;;  %v260_v18 = vrot.slane %v42_v8, 2  ;;  %v2745_v21 = vld [vmem:[%s3016_s3 + $0x8] sm:$0xff]  ;;  %v2752_v22 = vld [vmem:[%s3016_s3] sm:$0xff]  ;;  %vm377_vm4 = vcmask 64512  }
   0x8   :  { %2414 = vmatpush3.msk.msra.mxu0 %vm67_vm0, %v43_v5  ;;  %2410 = vmatprep.mubr.msk.f32.mxu0 %vm58_vm2, %v57_v13  ;;  %v257_v17 = vsel %vm254_vm3, %v255_v14, %v256_v15  ;;  %v2758_v23 = vld [vmem:[%s3015_s2] ss:$0 sm:$0xff]  ;;  %vm381_vm5 = vcmask 62464   ;;  %v2773_v45 = vld [vmem:[%s3016_s3 + $0x10] sm:$0xff]  ;;  %v2787_v49 = vld [vmem:[%s3018_s5 + $0x8] sm:$0xff]  ;;  %v2633_v50 = vmov 0.0  }
   0x9   :  { %2421 = vmatprep.subr.msk.mxu0 %vm67_vm0, %v2262_v12  ;;  %v259_v19 = vsel %vm254_vm3, %v256_v15, %v258_v16  ;;  %v261_v20 = vsel %vm254_vm3, %v258_v16, %v260_v18  ;;  %2429 = vmatprep.subr.mxu1 %v2745_v21  ;;  %vm2634_vm6 = vmmov 0   ;;  %v2800_v51 = vld [vmem:[%s3017_s4] ss:$0 sm:$0xff]  ;;  %vm656_vm7 = vcmask 61440   ;;  %v2819_v63 = vld [vmem:[%s3018_s5 + $0x10] sm:$0xff]  ;;  %v1055_v3 = vld [vmem:[%s3022_s9 + $0x8] sm:$0xff] }
   0xa   :  { %2430 = vmatpush3.msra.mxu1 %v2745_v21  ;;  %v2809_v62 = vld [vmem:[%s3018_s5] sm:$0xff]  ;;  %v2635_v4 = vmov 0.0|0.0   ;;  %vm896_vm8 = vcmask 60416   ;;  %vm1059_vm9 = vcmask 261120   ;;  %vm1133_vm10 = vcmask 32768  }
   0xb   :  { %2411 = vmatmul.mubr.msk.f32.gmra.mrb[2].mxu0 %vm58_vm2, %v56_v10  ;;  %2434 = vmatprep.subr.mxu1 %v2752_v22 }
   0xc   :  { %2415 = vmatprep.mubr.msk.f32.mxu0 %vm58_vm2, %v39_v1  ;;  %v2831_v1 = vld [vmem:[%s3020_s7] sm:$0xff] }
   0xf   :  { %2416 = vmatmul.mubr.msk.f32.vlgmr.msra.gmra.mrb[0].mxu0 %vm58_vm2, %v40_v2  ;;  %v1054_v2 = vld [vmem:[%s3022_s9] sm:$0xff] }
  0x10   :  { %2422 = vmatpush3.msk.msra.mxu0 %vm67_vm0, %v2262_v12  ;;  %2418 = vmatprep.mubr.msk.f32.mxu0 %vm58_vm2, %v41_v6  ;;  %v2842_v5 = vpack.c.bf16 %v1055_v3, %v1054_v2  ;;  %v2849_v12 = vld [vmem:[%s3019_s6] ss:$0 sm:$0xff] }
  0x11   :  { %2459 = vmatprep.subr.mxu0 %v2633_v50 }
  0x13   :  { %2419 = vmatmul.mubr.msk.f32.gmra.mrb[2].mxu0 %vm58_vm2, %v42_v8 }
  0x14   :  { %2423 = vmatprep.mubr.msk.f32.mxu0 %vm58_vm2, %v257_v17 }
  0x17   :  { %2424 = vmatmul.mubr.msk.f32.vlgmr.msra.gmra.mrb[0].mxu0 %vm58_vm2, %v259_v19 }
  0x18   :  { %2426 = vmatprep.mubr.msk.f32.mxu0 %vm58_vm2, %v261_v20  ;;  %2460 = vmatpush3.msra.mxu0 %v2831_v1  ;;  %v2856_v20 = vld [vmem:[%s3020_s7 + $0x8] sm:$0xff] }
  0x19   :  { %2464 = vmatprep.subr.mxu0 %v2633_v50 }
  0x1b   :  { %2427 = vmatmul.mubr.msk.f32.gmra.mrb[2].mxu0 %vm58_vm2, %v260_v18 }
  0x1c   :  { %2461 = vmatprep.mubr.msk.f32.mxu0 %vm2634_vm6, %v2633_v50 }
  0xea   :  { %v2425_v24 = vpop.f32.mrb[0].mxu0 }
  0xeb   :  { %v370_v25 = vadd.f32 %v2425_v24, %v2758_v23  ;;  %v339_v26 = vpop.f32.mrb[1].mxu0  ;;  %v2291_v24 = vld [vmem:[%s3014_s1 + $0x4] sm:$0xf] }
  0xec   :  { %v369_v27 = vadd.f32 %v2758_v23, %v339_v26  ;;  %v2288_v26 = vld [vmem:[%s3013_s0 + $0x28] sm:$0xff] }
  0xed   :  { %v374_v28 = vmax.f32 %v370_v25, 0.0  ;;  %v2287_v25 = vld [vmem:[%s3013_s0 + $0x20] sm:$0xff] }
  0xee   :  { %v373_v29 = vmax.f32 %v369_v27, 0.0  ;;  %v2428_v30 = vpop.f32.mrb[2].mxu0  ;;  %v1159_v27 = vrot.slane %v2287_v25, 1 }
  0xef   :  { %379 = vst.msk [vmem:[#allocation2 + $0x8] sm:$0xff] %vm377_vm4, %v374_v28  ;;  %v372_v31 = vadd.f32 %v2428_v30, %v2758_v23  ;;  %v349_v32 = vpop.f32.mrb[3].mxu0  ;;  %v1160_v28 = vrot.slane %v2288_v26, 1  ;;  %v2290_v30 = vld [vmem:[%s3013_s0 + $0x38] sm:$0xff] }
  0xf0   :  { %378 = vst.msk [vmem:[#allocation2] sm:$0xff] %vm377_vm4, %v373_v29  ;;  %v371_v33 = vadd.f32 %v2758_v23, %v349_v32  ;;  %v2289_v29 = vld [vmem:[%s3013_s0 + $0x30] sm:$0xff] }
  0xf1   :  { %v376_v34 = vmax.f32 %v372_v31, 0.0  ;;  %v1162_v31 = vrot.slane %v2289_v29, 1 }
  0xf2   :  { %v375_v35 = vmax.f32 %v371_v33, 0.0  ;;  %v1161_v33 = vsel %vm50_vm1, %v1159_v27, %v1160_v28 }
  0xf3   :  { %382 = vst.msk [vmem:[#allocation2 + $0x18] sm:$0x3f] %vm381_vm5, %v376_v34  ;;  %v1164_v34 = vrot.slane %v2290_v30, 1 }
  0xf4   :  { %380 = vst.msk [vmem:[#allocation2 + $0x10] sm:$0xff] %vm377_vm4, %v375_v35  ;;  %v1153_v35 = vld [vmem:[%s3014_s1] sm:$0xf] }
  0xf7   :  { %v383_v36 = vld [vmem:[#allocation2] ss:$2 sm:$0xff]  ;;  %v387_v37 = vld [vmem:[#allocation2 + $0x1] ss:$2 sm:$0xff] }
  0xf8   :  { %v390_v38 = vmax.f32 %v383_v36, %v387_v37  ;;  %v1163_v36 = vsel %vm50_vm1, %v1160_v28, %v1162_v31  ;;  %v1165_v37 = vsel %vm50_vm1, %v1162_v31, %v1164_v34 }
  0xfa   :  { %v397_v42 = vrot.slane %v390_v38, 1  ;;  %v560_v47 = vrot.slane %v390_v38, 2 }
  0xfb   :  { %v385_v39 = vld [vmem:[#allocation2 + $0x10] ss:$2 sm:$0x7f]  ;;  %v389_v40 = vld [vmem:[#allocation2 + $0x11] ss:$2 sm:$0x7f] }
  0xfc   :  { %v391_v41 = vmax.f32 %v385_v39, %v389_v40  ;;  %v1359_v39 = vrot.slane %v2287_v25, 2  ;;  %v1360_v40 = vrot.slane %v2288_v26, 2 }
  0xfe   :  { %v398_v43 = vrot.slane %v391_v41, 1  ;;  %v561_v46 = vrot.slane %v391_v41, 2 }
 0x100   :  { %v399_v44 = vsel %vm50_vm1, %v397_v42, %v398_v43  ;;  %v562_v48 = vsel %vm254_vm3, %v560_v47, %v561_v46  ;;  %v1361_v42 = vsel %vm254_vm3, %v1359_v39, %v1360_v40  ;;  %v1056_v47 = vld [vmem:[%s3022_s9 + $0x10] sm:$0xff] }
 0x101   :  { %2431 = vmatprep.mubr.msk.f32.mxu1 %vm377_vm4, %v399_v44 }
 0x102   :  { %2432 = vmatmul.mubr.msk.f32.vlgmr.msra.gmra.mrb[0].mxu1 %vm377_vm4, %v398_v43  ;;  %v1364_v43 = vrot.slane %v2290_v30, 2 }
 0x103   :  { %2435 = vmatpush3.msra.mxu1 %v2752_v22  ;;  %2436 = vmatprep.mubr.msk.f32.mxu1 %vm377_vm4, %v390_v38  ;;  %v2302_v38 = vld [vmem:[%s3014_s1 + $0x8] sm:$0xf] }
 0x104   :  { %2439 = vmatprep.subr.mxu1 %v2773_v45 }
 0x10a   :  { %2437 = vmatmul.mubr.msk.f32.vlgmr.msra.gmra.mrb[0].mxu1 %vm377_vm4, %v391_v41  ;;  %v1362_v41 = vrot.slane %v2289_v29, 2 }
 0x10b   :  { %2440 = vmatpush3.msra.mxu1 %v2773_v45  ;;  %2441 = vmatprep.mubr.msk.f32.mxu1 %vm377_vm4, %v562_v48  ;;  %v1057_v48 = vld [vmem:[%s3022_s9 + $0x18] sm:$0xff] }
 0x10c   :  { %2444 = vmatprep.subr.mxu1 %v2633_v50  ;;  %v1363_v44 = vsel %vm254_vm3, %v1360_v40, %v1362_v41 }
 0x112   :  { %2442 = vmatmul.mubr.msk.f32.vlgmr.msra.gmra.mrb[0].mxu1 %vm377_vm4, %v561_v46  ;;  %v1365_v46 = vsel %vm254_vm3, %v1362_v41, %v1364_v43 }
 0x113   :  { %2446 = vmatprep.mubr.msk.f32.mxu1 %vm2634_vm6, %v2633_v50  ;;  %2445 = vmatpush3.msra.mxu1 %v2787_v49 }
 0x114   :  { %2449 = vmatprep.subr.mxu1 %v2633_v50 }
 0x1e5   :  { %v2443_v52 = vpop.f32.mrb[0].mxu1 }
 0x1e6   :  { %v652_v53 = vadd.f32 %v2443_v52, %v2800_v51  ;;  %v633_v54 = vpop.f32.mrb[1].mxu1  ;;  %v2919_v52 = vpack.c.bf16 %v1057_v48, %v1056_v47 }
 0x1e7   :  { %v651_v55 = vadd.f32 %v2800_v51, %v633_v54 }
 0x1e8   :  { %v654_v56 = vmax.f32 %v652_v53, 0.0  ;;  %v902_v53 = vld [vmem:[%s3021_s8] sm:$0x1] }
 0x1e9   :  { %v653_v57 = vmax.f32 %v651_v55, 0.0 }
 0x1ea   :  { %657 = vst.msk [vmem:[#allocation3 + $0x8] sm:$0x1f] %vm656_vm7, %v654_v56 }
 0x1eb   :  { %655 = vst.msk [vmem:[#allocation3] sm:$0xff] %vm377_vm4, %v653_v57 }
 0x1f2   :  { %v658_v58 = vld [vmem:[#allocation3] ss:$2 sm:$0x3f]  ;;  %v660_v59 = vld [vmem:[#allocation3 + $0x1] ss:$2 sm:$0x3f] }
 0x1f3   :  { %v661_v60 = vmax.f32 %v658_v58, %v660_v59 }
 0x1f5   :  { %v666_v61 = vrot.slane %v661_v60, 1  ;;  %v813_v0 = vrot.slane %v661_v60, 2 }
 0x1f7   :  { %2447 = vmatmul.mubr.msk.f32.vlgmr.msra.gmra.mrb[2].mxu1 %vm377_vm4, %v666_v61 }
 0x1f8   :  { %2450 = vmatpush3.msra.mxu1 %v2809_v62  ;;  %2451 = vmatprep.mubr.msk.f32.mxu1 %vm2634_vm6, %v2633_v50 }
 0x1f9   :  { %2454 = vmatprep.subr.mxu1 %v2633_v50 }
 0x1fb   :  { %2452 = vmatmul.mubr.msk.f32.vlgmr.msra.gmra.mrb[4].mxu1 %vm377_vm4, %v661_v60 }
 0x1fc   :  { %2455 = vmatpush3.msra.mxu1 %v2819_v63  ;;  %2456 = vmatprep.mubr.msk.f32.mxu1 %vm2634_vm6, %v2633_v50 }
 0x1fd   :  { %2555 = vmatprep.subr.bf16.mxu1 %v2635_v4 }
 0x1ff   :  { %2457 = vmatmul.mubr.msk.f32.vlgmr.msra.gmra.mrb[6].mxu1 %vm377_vm4, %v813_v0 }
 0x200   :  { %2477 = vmatprep.mubr.msk.f32.mxu1 %vm2634_vm6, %v2633_v50  ;;  %2557 = vmatpush3.bf16.msra.mxu1 %v2842_v5 }
 0x201   :  { %2558 = vmatprep.subr.bf16.mxu1 %v2635_v4 }
 0x204   :  { %2560 = vmatpush3.bf16.msra.mxu1 %v2919_v52 }
 0x205   :  { %2504 = vmatprep.subr.mxu1 %v2745_v21 }
 0x2ca   :  { %v735_v6 = vpop.f32.mrb[2].mxu1 }
 0x2cb   :  { %v2448_v7 = vpop.f32.mrb[3].mxu1 }
 0x2ce   :  { %v807_v8 = vpop.f32.mrb[4].mxu1 }
 0x2cf   :  { %v808_v9 = vadd.f32 %v807_v8, %v735_v6  ;;  %v2453_v10 = vpop.f32.mrb[5].mxu1 }
 0x2d2   :  { %v882_v11 = vpop.f32.mrb[6].mxu1 }
 0x2d3   :  { %v886_v13 = vadd.f32 %v882_v11, %v808_v9  ;;  %v2458_v14 = vpop.f32.mrb[7].mxu1 }
 0x2d5   :  { %v894_v15 = vadd.f32 %v2849_v12, %v886_v13 }
 0x2d7   :  { %v895_v16 = vmax.f32 %v894_v15, 0.0 }
 0x2d9   :  { %897 = vst.msk [vmem:[#allocation4] sm:$0xf] %vm896_vm8, %v895_v16 }
 0x2e0   :  { %v898_v17 = vld [vmem:[#allocation4] ss:$2 sm:$0x3]  ;;  %v900_v18 = vld [vmem:[#allocation4 + $0x1] ss:$2 sm:$0x3] }
 0x2e1   :  { %v901_v19 = vmax.f32 %v898_v17, %v900_v18 }
 0x2e3   :  { %2462 = vmatmul.mubr.msk.f32.vlgmr.msra.gmra.mrb[4].mxu0 %vm377_vm4, %v901_v19  ;;  %v979_v32 = vrot.slane %v901_v19, 1 }
 0x2e4   :  { %2465 = vmatpush3.msra.mxu0 %v2856_v20  ;;  %2466 = vmatprep.mubr.msk.f32.mxu0 %vm2634_vm6, %v2633_v50 }
 0x2e5   :  { %2480 = vmatprep.subr.msk.mxu0 %vm67_vm0, %v2291_v24 }
 0x2eb   :  { %2467 = vmatmul.mubr.msk.f32.vlgmr.msra.gmra.mrb[4].mxu0 %vm377_vm4, %v979_v32 }
 0x2ec   :  { %2481 = vmatpush3.msk.msra.mxu0 %vm67_vm0, %v2291_v24  ;;  %2482 = vmatprep.mubr.msk.f32.mxu0 %vm58_vm2, %v1161_v33 }
 0x2ed   :  { %2488 = vmatprep.subr.msk.mxu0 %vm67_vm0, %v1153_v35 }
 0x2ef   :  { %2483 = vmatmul.mubr.msk.f32.vlgmr.msra.gmra.mrb[6].mxu0 %vm58_vm2, %v1163_v36 }
 0x2f0   :  { %2489 = vmatpush3.msk.msra.mxu0 %vm67_vm0, %v1153_v35  ;;  %2485 = vmatprep.mubr.msk.f32.mxu0 %vm58_vm2, %v1165_v37 }
 0x2f1   :  { %2496 = vmatprep.subr.msk.mxu0 %vm67_vm0, %v2302_v38 }
 0x2f3   :  { %2486 = vmatmul.mubr.msk.f32.gmra.mrb[8].mxu0 %vm58_vm2, %v1164_v34 }
 0x2f4   :  { %2490 = vmatprep.mubr.msk.f32.mxu0 %vm58_vm2, %v2287_v25 }
 0x2f7   :  { %2491 = vmatmul.mubr.msk.f32.vlgmr.msra.gmra.mrb[6].mxu0 %vm58_vm2, %v2288_v26 }
 0x2f8   :  { %2497 = vmatpush3.msk.msra.mxu0 %vm67_vm0, %v2302_v38  ;;  %2493 = vmatprep.mubr.msk.f32.mxu0 %vm58_vm2, %v2289_v29 }
 0x2f9   :  { %2534 = vmatprep.subr.mxu0 %v2633_v50 }
 0x2fb   :  { %2494 = vmatmul.mubr.msk.f32.gmra.mrb[8].mxu0 %vm58_vm2, %v2290_v30 }
 0x2fc   :  { %2498 = vmatprep.mubr.msk.f32.mxu0 %vm58_vm2, %v1361_v42 }
 0x2ff   :  { %2499 = vmatmul.mubr.msk.f32.vlgmr.msra.gmra.mrb[6].mxu0 %vm58_vm2, %v1363_v44 }
 0x300   :  { %2501 = vmatprep.mubr.msk.f32.mxu0 %vm58_vm2, %v1365_v46  ;;  %2535 = vmatpush3.msra.mxu0 %v2831_v1 }
 0x301   :  { %2539 = vmatprep.subr.mxu0 %v2633_v50 }
 0x303   :  { %2502 = vmatmul.mubr.msk.f32.gmra.mrb[8].mxu0 %vm58_vm2, %v1364_v43 }
 0x304   :  { %2536 = vmatprep.mubr.msk.f32.mxu0 %vm2634_vm6, %v2633_v50 }
 0x3be   :  { %v1048_v54 = vpop.f32.mrb[4].mxu0 }
 0x3bf   :  { %v2567_v55 = vadd.f32 %v1048_v54, %v902_v53  ;;  %v2468_v56 = vpop.f32.mrb[5].mxu0 }
 0x3c1   :  { %v1053_v57 = vmax.f32 %v2567_v55, 0.0 }
 0x3c3   :  { %2478 = vmatmul.mubr.msk.f32.vlgmr.msra.gmra.mrb[8].mxu1 %vm1059_vm9, %v1053_v57 }
 0x3c4   :  { %2505 = vmatpush3.msra.mxu1 %v2745_v21 }
 0x3c5   :  { %2509 = vmatprep.subr.mxu1 %v2752_v22 }
 0x3d2   :  { %v2500_v58 = vpop.f32.mrb[6].mxu0 }
 0x3d3   :  { %v1474_v59 = vadd.f32 %v2500_v58, %v2758_v23  ;;  %v1443_v60 = vpop.f32.mrb[7].mxu0 }
 0x3d4   :  { %v1473_v61 = vadd.f32 %v2758_v23, %v1443_v60  ;;  %v1993_v60 = vld [vmem:[%s3021_s8] sm:$0x1]  ;;  %s2636_s8 = smov [#allocation5]  }
 0x3d5   :  { %v1478_v0 = vmax.f32 %v1474_v59, 0.0 }
 0x3d6   :  { %v1477_v1 = vmax.f32 %v1473_v61, 0.0  ;;  %v2503_v2 = vpop.f32.mrb[8].mxu0 }
 0x3d7   :  { %1482 = vst.msk [vmem:[#allocation2 + $0x8] sm:$0xff] %vm377_vm4, %v1478_v0  ;;  %v1476_v3 = vadd.f32 %v2503_v2, %v2758_v23  ;;  %v1453_v6 = vpop.f32.mrb[9].mxu0 }
 0x3d8   :  { %1481 = vst.msk [vmem:[#allocation2] sm:$0xff] %vm377_vm4, %v1477_v1  ;;  %v1475_v21 = vadd.f32 %v2758_v23, %v1453_v6 }
 0x3d9   :  { %v1480_v7 = vmax.f32 %v1476_v3, 0.0 }
 0x3da   :  { %v1479_v8 = vmax.f32 %v1475_v21, 0.0 }
 0x3db   :  { %1484 = vst.msk [vmem:[#allocation2 + $0x18] sm:$0x3f] %vm381_vm5, %v1480_v7 }
 0x3dc   :  { %1483 = vst.msk [vmem:[#allocation2 + $0x10] sm:$0xff] %vm377_vm4, %v1479_v8 }
 0x3df   :  { %v1485_v9 = vld [vmem:[#allocation2] ss:$2 sm:$0xff]  ;;  %v1487_v10 = vld [vmem:[#allocation2 + $0x1] ss:$2 sm:$0xff] }
 0x3e0   :  { %v1489_v11 = vmax.f32 %v1485_v9, %v1487_v10 }
 0x3e2   :  { %v1495_v16 = vrot.slane %v1489_v11, 1  ;;  %v1657_v19 = vrot.slane %v1489_v11, 2 }
 0x3e3   :  { %v1486_v13 = vld [vmem:[#allocation2 + $0x10] ss:$2 sm:$0x7f]  ;;  %v1488_v14 = vld [vmem:[#allocation2 + $0x11] ss:$2 sm:$0x7f] }
 0x3e4   :  { %v1490_v15 = vmax.f32 %v1486_v13, %v1488_v14 }
 0x3e6   :  { %v1496_v17 = vrot.slane %v1490_v15, 1  ;;  %v1658_v23 = vrot.slane %v1490_v15, 2 }
 0x3e8   :  { %v1497_v18 = vsel %vm50_vm1, %v1495_v16, %v1496_v17  ;;  %v1659_v24 = vsel %vm254_vm3, %v1657_v19, %v1658_v23 }
 0x3e9   :  { %2506 = vmatprep.mubr.msk.f32.mxu1 %vm377_vm4, %v1497_v18 }
 0x3ea   :  { %2507 = vmatmul.mubr.msk.f32.vlgmr.msra.gmra.mrb[10].mxu1 %vm377_vm4, %v1496_v17 }
 0x3eb   :  { %2510 = vmatpush3.msra.mxu1 %v2752_v22  ;;  %2511 = vmatprep.mubr.msk.f32.mxu1 %vm377_vm4, %v1489_v11  ;;  %v1058_v22 = vld [vmem:[%s3023_s10] sm:$0x1] }
 0x3ec   :  { %2514 = vmatprep.subr.mxu1 %v2773_v45 }
 0x3f2   :  { %2512 = vmatmul.mubr.msk.f32.vlgmr.msra.gmra.mrb[10].mxu1 %vm377_vm4, %v1490_v15 }
 0x3f3   :  { %2515 = vmatpush3.msra.mxu1 %v2773_v45  ;;  %2516 = vmatprep.mubr.msk.f32.mxu1 %vm377_vm4, %v1659_v24 }
 0x3f4   :  { %2519 = vmatprep.subr.mxu1 %v2633_v50 }
 0x3fa   :  { %2517 = vmatmul.mubr.msk.f32.vlgmr.msra.gmra.mrb[10].mxu1 %vm377_vm4, %v1658_v23 }
 0x3fb   :  { %2520 = vmatpush3.msra.mxu1 %v2787_v49  ;;  %2521 = vmatprep.mubr.msk.f32.mxu1 %vm2634_vm6, %v2633_v50 }
 0x3fc   :  { %2524 = vmatprep.subr.mxu1 %v2633_v50 }
 0x496   :  { %v1129_v25 = vpop.f32.mrb[8].mxu1 }
 0x497   :  { %v2956_v45 = vadd.f32 %v1129_v25, %v1058_v22  ;;  %v2479_v26 = vpop.f32.mrb[9].mxu1 }
 0x499   :  { %v1134_v27 = vsel %vm1133_vm10, %v2956_v45, -inf }
 0x49a   :  { %1135 = vmax.xlane.f32.xlu0 %v1134_v27 }
 0x4cd   :  { %v2518_v28 = vpop.f32.mrb[10].mxu1 }
 0x4ce   :  { %v1749_v49 = vadd.f32 %v2518_v28, %v2800_v51  ;;  %v1730_v29 = vpop.f32.mrb[11].mxu1 }
 0x4cf   :  { %v1748_v30 = vadd.f32 %v2800_v51, %v1730_v29 }
 0x4d0   :  { %v1751_v31 = vmax.f32 %v1749_v49, 0.0 }
 0x4d1   :  { %v1750_v32 = vmax.f32 %v1748_v30, 0.0 }
 0x4d2   :  { %1753 = vst.msk [vmem:[#allocation3 + $0x8] sm:$0x1f] %vm656_vm7, %v1751_v31 }
 0x4d3   :  { %1752 = vst.msk [vmem:[#allocation3] sm:$0xff] %vm377_vm4, %v1750_v32 }
 0x4da   :  { %v1754_v33 = vld [vmem:[#allocation3] ss:$2 sm:$0x3f]  ;;  %v1755_v34 = vld [vmem:[#allocation3 + $0x1] ss:$2 sm:$0x3f] }
 0x4db   :  { %v1756_v35 = vmax.f32 %v1754_v33, %v1755_v34 }
 0x4dd   :  { %v1760_v36 = vrot.slane %v1756_v35, 1  ;;  %v1906_v51 = vrot.slane %v1756_v35, 2 }
 0x4df   :  { %2522 = vmatmul.mubr.msk.f32.vlgmr.msra.gmra.mrb[12].mxu1 %vm377_vm4, %v1760_v36 }
 0x4e0   :  { %2525 = vmatpush3.msra.mxu1 %v2809_v62  ;;  %2526 = vmatprep.mubr.msk.f32.mxu1 %vm2634_vm6, %v2633_v50 }
 0x4e1   :  { %2529 = vmatprep.subr.mxu1 %v2633_v50 }
 0x4e3   :  { %2527 = vmatmul.mubr.msk.f32.vlgmr.msra.gmra.mrb[14].mxu1 %vm377_vm4, %v1756_v35 }
 0x4e4   :  { %2530 = vmatpush3.msra.mxu1 %v2819_v63  ;;  %2531 = vmatprep.mubr.msk.f32.mxu1 %vm2634_vm6, %v2633_v50 }
 0x4e5   :  { %2561 = vmatprep.subr.bf16.mxu1 %v2635_v4 }
 0x4e7   :  { %2532 = vmatmul.mubr.msk.f32.vlgmr.msra.gmra.mrb[16].mxu1 %vm377_vm4, %v1906_v51 }
 0x4e8   :  { %2563 = vmatpush3.bf16.msra.mxu1 %v2842_v5  ;;  %2552 = vmatprep.mubr.msk.f32.mxu1 %vm2634_vm6, %v2633_v50 }
 0x4e9   :  { %2564 = vmatprep.subr.bf16.mxu1 %v2635_v4 }
 0x4ec   :  { %2566 = vmatpush3.bf16.msra.mxu1 %v2919_v52 }
 0x527   :  { %v1136_v62 = vpop.xlane.xlu0 %1135 }
 0x528   :  { %v1137_v63 = vsub.f32 %v2956_v45, %v1136_v62 }
 0x52a   :  { %v1138_v37 = vmul.f32 1.442695, %v1137_v63 }
 0x52c   :  { %2601 = vpow2.f32 %v1138_v37 }
 0x536   :  { %v2602_v38 = vpop.eup %2601 }
 0x537   :  { %v1140_v39 = vsel %vm1133_vm10, %v2602_v38, 0.0 }
 0x538   :  { %1141 = vadd.xlane.f32.xlu1 %v1140_v39 }
 0x5b2   :  { %v1829_v40 = vpop.f32.mrb[12].mxu1 }
 0x5b3   :  { %v2523_v41 = vpop.f32.mrb[13].mxu1 }
 0x5b6   :  { %v1901_v42 = vpop.f32.mrb[14].mxu1 }
 0x5b7   :  { %v1902_v5 = vadd.f32 %v1901_v42, %v1829_v40  ;;  %v2528_v43 = vpop.f32.mrb[15].mxu1 }
 0x5ba   :  { %v1975_v44 = vpop.f32.mrb[16].mxu1 }
 0x5bb   :  { %v1979_v46 = vadd.f32 %v1975_v44, %v1902_v5  ;;  %v2533_v47 = vpop.f32.mrb[17].mxu1 }
 0x5bd   :  { %v1987_v4 = vadd.f32 %v2849_v12, %v1979_v46 }
 0x5bf   :  { %v1988_v48 = vmax.f32 %v1987_v4, 0.0 }
 0x5c1   :  { %1989 = vst.msk [vmem:[#allocation4] sm:$0xf] %vm896_vm8, %v1988_v48 }
 0x5c5   :  { %v1142_v52 = vpop.xlane.xlu1 %1141 }
 0x5c6   :  { %2603 = vlog2.f32 %v1142_v52 }
 0x5c8   :  { %v1990_v53 = vld [vmem:[#allocation4] ss:$2 sm:$0x3]  ;;  %v1991_v54 = vld [vmem:[#allocation4 + $0x1] ss:$2 sm:$0x3] }
 0x5c9   :  { %v1992_v55 = vmax.f32 %v1990_v53, %v1991_v54 }
 0x5cb   :  { %2537 = vmatmul.mubr.msk.f32.vlgmr.msra.gmra.mrb[10].mxu0 %vm377_vm4, %v1992_v55  ;;  %v2070_v58 = vrot.slane %v1992_v55, 1 }
 0x5cc   :  { %2540 = vmatpush3.msra.mxu0 %v2856_v20  ;;  %2541 = vmatprep.mubr.msk.f32.mxu0 %vm2634_vm6, %v2633_v50  ;;  %v2149_v50 = vld [vmem:[%s3023_s10] sm:$0x1]  ;;  %s2243_s10 = sshll.u32 %s2636_s8, 4  ;;  %s2244_s10 = int_to_ptr.vmem [resolvable:$true] %s2243_s10 }
 0x5cd   :  { %s2609_s13 = scalar_lea.vmem %s2244_s10, 32  ;;  %p2614_p1 = scmp.lt.s32.totalorder %s2244_s10, %s2244_s10 }
 0x5ce   :  { %p2610_p0 = scmp.ne.s32.totalorder %s2244_s10, %s2609_s13  ;;  %p2615_p2 = scmp.lt.s32.totalorder %s2609_s13, %s2609_s13 }
 0x5d0   :  { %v2604_v56 = vpop.eup %2603  ;;  %p2616_p3 = por %p2615_p2, %p2614_p1 }
 0x5d1   :  { %v1144_v57 = vmul.f32 0.6931472, %v2604_v56 }
 0x5d2   :  { %p2617_p4 = pnand %p2616_p3, %p2610_p0 }
 0x5d3   :  { %v1145_v59 = vadd.f32 %v1144_v57, %v1136_v62  ;;  %2542 = vmatmul.mubr.msk.f32.vlgmr.msra.gmra.mrb[10].mxu0 %vm377_vm4, %v2070_v58 }
 0x5d5   :  { %v1146_v12 = vsub.f32 %v2956_v45, %v1145_v59 }
 0x5d7   :  { %1147 = vst.msk [vmem:[#allocation5] sm:$0x1] %vm1133_vm10, %v1146_v12 }
 0x6a6   :  { %v2139_v61 = vpop.f32.mrb[10].mxu0 }
 0x6a7   :  { %v2568_v0 = vadd.f32 %v2139_v61, %v1993_v60  ;;  %v2543_v20 = vpop.f32.mrb[11].mxu0 }
 0x6a9   :  { %v2144_v1 = vmax.f32 %v2568_v0, 0.0 }
 0x6ab   :  { %2553 = vmatmul.mubr.msk.f32.vlgmr.msra.gmra.mrb[18].mxu1 %vm1059_vm9, %v2144_v1 }
 0x77e   :  { %v2219_v2 = vpop.f32.mrb[18].mxu1 }
 0x77f   :  { %v2220_v3 = vadd.f32 %v2219_v2, %v2149_v50  ;;  %v2554_v6 = vpop.f32.mrb[19].mxu1 }
 0x781   :  { %v2223_v21 = vsel %vm1133_vm10, %v2220_v3, -inf }
 0x782   :  { %2224 = vmax.xlane.f32.xlu0 %v2223_v21 }
 0x80f   :  { %v2225_v7 = vpop.xlane.xlu0 %2224 }
 0x810   :  { %v2226_v8 = vsub.f32 %v2220_v3, %v2225_v7 }
 0x812   :  { %v2227_v9 = vmul.f32 1.442695, %v2226_v8 }
 0x814   :  { %2605 = vpow2.f32 %v2227_v9 }
 0x81e   :  { %v2606_v10 = vpop.eup %2605 }
 0x81f   :  { %v2229_v11 = vsel %vm1133_vm10, %v2606_v10, 0.0 }
 0x820   :  { %2230 = vadd.xlane.f32.xlu1 %v2229_v11 }
 0x8ad   :  { %v2231_v13 = vpop.xlane.xlu1 %2230 }
 0x8ae   :  { %2607 = vlog2.f32 %v2231_v13 }
 0x8b8   :  { %v2608_v14 = vpop.eup %2607 }
 0x8b9   :  { %v2233_v15 = vmul.f32 0.6931472, %v2608_v14 }
 0x8bb   :  { %v2234_v16 = vadd.f32 %v2233_v15, %v2225_v7 }
 0x8bd   :  { %v2235_v17 = vsub.f32 %v2220_v3, %v2234_v16 }
 0x8bf   :  { %2236 = vst.msk [vmem:[#allocation5 + $0x1] sm:$0x1] %vm1133_vm10, %v2235_v17 }
 0x8c0   :  { %2620 = shalt.err (!%p2617_p4)
}
 0x8c1   :  { %s2621_s16 = scalar_lea.hbm %s3024_s11, 32 }
 0x8c2   :  { %p2622_p5 = scmp.ne.s32.totalorder %s3024_s11, %s2621_s16  ;;  %p2625_p6 = scmp.lt.u32.totalorder %s2621_s16, %s3024_s11 }
 0x8c4   :  { %p2627_p7 = pnand %p2625_p6, %p2622_p5 }
 0x8c6   :  { %2630 = shalt.err (!%p2627_p7)
}
 0x8c7   :  { %2246 = dma.vmem_to_hbm [thread:$0]  %s2244_s10, 32, %s3024_s11, [#allocation6]  }
 0x8c8   :  { %2631 = dma.done.wait [#allocation6], 32  }
 0x8c9   :  { %2632 = vsyncadd [#allocation6], 4294967264 }
 0x8ca   :  { %2250 = vsyncpa [#allocation6], 1 }

</bundles_post_ra>
